<compile_context>
chip_gen: v6e
topology: v6e:2x2x1
jax: 0.10.0
libtpu: 0.0.40
codegen_flags: <defaults>
</compile_context>

<pallas_src>
import functools
import math

import jax
import jax.numpy as jnp
from jax import lax
from jax.experimental import pallas as pl
from jax.experimental.pallas import tpu as pltpu


def _rup(x, m):
    return ((x + m - 1) // m) * m


_VMEM_LIMIT = 32 << 20           # safe on v5e/v6e (128 MiB) and v7x (64 MiB)
_MAX_TILE_BYTES = 4 << 20        # per pipelined bf16 operand buffer


def _largest_tile(total, cap, unit=128):
    """Largest multiple of `unit`, <= cap, that divides `total` (a unit multiple)."""
    cap = max(unit, (cap // unit) * unit)
    best = unit
    for mult in range(1, total // unit + 1):
        t = mult * unit
        if t > cap:
            break
        if total % t == 0:
            best = t
    return best


# ----------------------------------------------------------------------------
# Pallas kernel 1: tiled matmul with fused per-output-channel scale/bias (+ReLU)
#   bf16 operands, f32 accumulator in VMEM scratch, K as trailing grid axis.
# ----------------------------------------------------------------------------
def _mm_kernel(a_ref, b_ref, s_ref, c_ref, o_ref, acc_ref, *, relu):
    @pl.when(pl.program_id(2) == 0)
    def _():
        acc_ref[...] = jnp.zeros_like(acc_ref)

    acc_ref[...] += jnp.dot(a_ref[...], b_ref[...],
                            preferred_element_type=jnp.float32)

    @pl.when(pl.program_id(2) == pl.num_programs(2) - 1)
    def _():
        y = acc_ref[...] * s_ref[...] + c_ref[...]
        if relu:
            y = jnp.maximum(y, 0.0)
        o_ref[...] = y.astype(o_ref.dtype)


def _pick_mm_tiles(M, K, N):
    Np = _rup(N, 128)
    Kp = _rup(K, 128)
    if M >= 256:
        tm = 256
        Mp = _rup(M, tm)
        tn = _largest_tile(Np, 256)
    else:
        # small-M (weight-streaming) path: big lane-dense tiles, few grid steps.
        tm = _rup(max(M, 1), 16)          # bf16 packs 16 rows / vreg (v5e-friendly)
        Mp = tm
        tn = _largest_tile(Np, 512)
    tk_cap = min(4096,
                 _MAX_TILE_BYTES // (2 * tn),
                 _MAX_TILE_BYTES // (2 * tm))
    tk = _largest_tile(Kp, tk_cap)
    return Mp, Kp, Np, tm, tk, tn


@functools.partial(jax.jit, static_argnames=("relu", "out_dtype"))
def matmul_scale_bias(a, b, scale, bias, *, relu, out_dtype=jnp.bfloat16):
    """out = [relu]( (a @ b) * scale + bias ),  a:(M,K) b:(K,N) scale/bias:(N,)."""
    M, K = a.shape
    N = b.shape[1]
    Mp, Kp, Np, tm, tk, tn = _pick_mm_tiles(M, K, N)

    a_p = a.astype(jnp.bfloat16)
    b_p = b.astype(jnp.bfloat16)
    if (Mp, Kp) != (M, K):
        a_p = jnp.pad(a_p, ((0, Mp - M), (0, Kp - K)))
    if (Kp, Np) != (K, N):
        b_p = jnp.pad(b_p, ((0, Kp - K), (0, Np - N)))
    s_p = scale.astype(jnp.float32).reshape(1, N)
    c_p = bias.astype(jnp.float32).reshape(1, N)
    if Np != N:
        s_p = jnp.pad(s_p, ((0, 0), (0, Np - N)))
        c_p = jnp.pad(c_p, ((0, 0), (0, Np - N)))

    out = pl.pallas_call(
        functools.partial(_mm_kernel, relu=relu),
        out_shape=jax.ShapeDtypeStruct((Mp, Np), out_dtype),
        grid_spec=pltpu.PrefetchScalarGridSpec(
            num_scalar_prefetch=0,
            grid=(Mp // tm, Np // tn, Kp // tk),
            in_specs=[
                pl.BlockSpec((tm, tk), lambda i, j, k: (i, k)),
                pl.BlockSpec((tk, tn), lambda i, j, k: (k, j)),
                pl.BlockSpec((1, tn), lambda i, j, k: (0, j)),
                pl.BlockSpec((1, tn), lambda i, j, k: (0, j)),
            ],
            out_specs=pl.BlockSpec((tm, tn), lambda i, j, k: (i, j)),
            scratch_shapes=[pltpu.VMEM((tm, tn), jnp.float32)],
        ),
        compiler_params=pltpu.CompilerParams(
            dimension_semantics=("parallel", "parallel", "arbitrary"),
            vmem_limit_bytes=_VMEM_LIMIT),
    )(a_p, b_p, s_p, c_p)
    if (Mp, Np) != (M, N):
        out = out[:M, :N]
    return out


# ----------------------------------------------------------------------------
# Pallas kernel 2: fused elementwise  relu(a*sa + b*sb + c)   (BN+ReLU, residual)
#   bf16 operands/output (HBM-bound), f32 math inside the kernel.
# ----------------------------------------------------------------------------
def _elt_kernel(a_ref, b_ref, sa_ref, sb_ref, c_ref, o_ref, *, relu):
    a = a_ref[...].astype(jnp.float32)
    b = b_ref[...].astype(jnp.float32)
    y = a * sa_ref[...] + b * sb_ref[...] + c_ref[...]
    if relu:
        y = jnp.maximum(y, 0.0)
    o_ref[...] = y.astype(o_ref.dtype)


@functools.partial(jax.jit, static_argnames=("relu",))
def _fused_affine2_2d(a, b, sa, sb, c, *, relu):
    M, C = a.shape
    Cp = _rup(C, 128)
    # ~1 MiB bf16 per operand block -> HBM-roofline regime on v5e/v6e/v7x.
    budget = max(16, min(2048, (1 << 20) // (Cp * 2)))
    budget = (budget // 16) * 16
    if M <= budget:
        etm = _rup(M, 16)
        Mp = etm
    else:
        etm = budget
        Mp = _rup(M, etm)

    def pad2(z):
        z = z.astype(jnp.bfloat16)
        if (Mp, Cp) != (M, C):
            z = jnp.pad(z, ((0, Mp - M), (0, Cp - C)))
        return z

    def pad1(z):
        z = z.astype(jnp.float32).reshape(1, C)
        if Cp != C:
            z = jnp.pad(z, ((0, 0), (0, Cp - C)))
        return z

    out = pl.pallas_call(
        functools.partial(_elt_kernel, relu=relu),
        out_shape=jax.ShapeDtypeStruct((Mp, Cp), jnp.bfloat16),
        grid_spec=pltpu.PrefetchScalarGridSpec(
            num_scalar_prefetch=0,
            grid=(Mp // etm,),
            in_specs=[
                pl.BlockSpec((etm, Cp), lambda i: (i, 0)),
                pl.BlockSpec((etm, Cp), lambda i: (i, 0)),
                pl.BlockSpec((1, Cp), lambda i: (0, 0)),
                pl.BlockSpec((1, Cp), lambda i: (0, 0)),
                pl.BlockSpec((1, Cp), lambda i: (0, 0)),
            ],
            out_specs=pl.BlockSpec((etm, Cp), lambda i: (i, 0)),
        ),
        compiler_params=pltpu.CompilerParams(
            dimension_semantics=("parallel",),
            vmem_limit_bytes=_VMEM_LIMIT),
    )(pad2(a), pad2(b), pad1(sa), pad1(sb), pad1(c))
    if (Mp, Cp) != (M, C):
        out = out[:M, :C]
    return out


def fused_affine2(a_nhwc, b_nhwc, sa, sb, bias, relu):
    N, H, W, C = a_nhwc.shape
    out = _fused_affine2_2d(a_nhwc.reshape(-1, C), b_nhwc.reshape(-1, C),
                            sa, sb, bias, relu=relu)
    return out.reshape(N, H, W, C)


# ----------------------------------------------------------------------------
# Pallas kernel 3: fused attention (CA and SA), energy stays in VMEM.
#   Both contractions are canonical (M,K)x(K,N); outputs are lane-dense over C.
# ----------------------------------------------------------------------------
def _ca_kernel(kT_ref, q_ref, v_ref, o_ref):
    # kT: (1, C, HW), q: (1, HW, tr) column block of Q, v: (1, HW, C).
    # energy^T block (C, tr) stays in VMEM; softmax along axis 0 (channel dim).
    kT = kT_ref[0]
    q = q_ref[0]
    v = v_ref[0]
    eT = jnp.dot(kT, q, preferred_element_type=jnp.float32)       # (C, tr)
    m = jnp.max(eT, axis=0, keepdims=True)
    p = jnp.exp(eT - m)
    s = jnp.sum(p, axis=0, keepdims=True)
    attnT = (p * pl.reciprocal(s, approx=True)).astype(v.dtype)   # (C, tr)
    # out^T(HW, tr) = V^T(HW, C) @ attn^T(C, tr)   -> lane-dense (C-major) output
    o_ref[0] = jnp.dot(v, attnT, preferred_element_type=jnp.float32)


@jax.jit
def _ca_attention(kT, q, v):
    """kT:(N,C,HW), q/v:(N,HW,C) -> out:(N,HW,C) = [softmax(Q K^T) @ V]^T per batch."""
    N, C, HW = kT.shape
    tr = 256 if C % 256 == 0 else (128 if C % 128 == 0 else C)
    return pl.pallas_call(
        _ca_kernel,
        out_shape=jax.ShapeDtypeStruct((N, HW, C), jnp.float32),
        grid_spec=pltpu.PrefetchScalarGridSpec(
            num_scalar_prefetch=0,
            grid=(N, C // tr),
            in_specs=[
                pl.BlockSpec((1, C, HW), lambda b, r: (b, 0, 0)),
                pl.BlockSpec((1, HW, tr), lambda b, r: (b, 0, r)),
                pl.BlockSpec((1, HW, C), lambda b, r: (b, 0, 0)),
            ],
            out_specs=pl.BlockSpec((1, HW, tr), lambda b, r: (b, 0, r)),
        ),
        compiler_params=pltpu.CompilerParams(
            dimension_semantics=("parallel", "parallel"),
            vmem_limit_bytes=_VMEM_LIMIT),
    )(kT.astype(jnp.bfloat16), q.astype(jnp.bfloat16), v.astype(jnp.bfloat16))


def _sa_kernel(q_ref, kT_ref, v_ref, o_ref):
    # q: (1, HW, C), kT: (1, C, HW), v: (1, HW, tc) column block.
    q = q_ref[0]
    kT = kT_ref[0]
    v = v_ref[0]
    e = jnp.dot(q, kT, preferred_element_type=jnp.float32)        # (HW, HW)
    m = jnp.max(e, axis=-1, keepdims=True)
    p = jnp.exp(e - m)
    s = jnp.sum(p, axis=-1, keepdims=True)
    attn = (p * pl.reciprocal(s, approx=True)).astype(v.dtype)
    o_ref[0] = jnp.dot(attn, v, preferred_element_type=jnp.float32)  # (HW, tc)


@jax.jit
def _sa_attention(q, kT, v):
    """q/v:(N,HW,C), kT:(N,C,HW) -> out:(N,HW,C) = softmax(q kT) @ v per batch."""
    N, HW, C = q.shape
    if C % 512 == 0:
        tc = 512
    elif C % 256 == 0:
        tc = 256
    elif C % 128 == 0:
        tc = 128
    else:
        tc = C
    return pl.pallas_call(
        _sa_kernel,
        out_shape=jax.ShapeDtypeStruct((N, HW, C), jnp.float32),
        grid_spec=pltpu.PrefetchScalarGridSpec(
            num_scalar_prefetch=0,
            grid=(N, C // tc),
            in_specs=[
                pl.BlockSpec((1, HW, C), lambda b, j: (b, 0, 0)),
                pl.BlockSpec((1, C, HW), lambda b, j: (b, 0, 0)),
                pl.BlockSpec((1, HW, tc), lambda b, j: (b, 0, j)),
            ],
            out_specs=pl.BlockSpec((1, HW, tc), lambda b, j: (b, 0, j)),
        ),
        compiler_params=pltpu.CompilerParams(
            dimension_semantics=("parallel", "parallel"),
            vmem_limit_bytes=_VMEM_LIMIT),
    )(q.astype(jnp.bfloat16), kT.astype(jnp.bfloat16), v.astype(jnp.bfloat16))


# ----------------------------------------------------------------------------
# Conv2d = im2col (glue, bf16) + Pallas matmul with fused BN/ReLU epilogue
# ----------------------------------------------------------------------------
# TODO(synk): im2col is still materialized in HBM for k>1 convs; folding the
#             kh*kw taps into the matmul's K grid axis (Element-offset indexing
#             of the padded NHWC input) would cut activation DMA by kh*kw.
@functools.partial(jax.jit,
                   static_argnames=("stride", "padding", "dilation", "relu",
                                    "out_dtype"))
def conv2d(x, w, scale, bias, *, stride=1, padding=0, dilation=1, relu=True,
           out_dtype=jnp.bfloat16):
    """x: (N,H,W,Cin) NHWC, w: (kh,kw,Cin,Cout) HWIO."""
    N, H, W, C = x.shape
    kh, kw, _, Cout = w.shape
    x = x.astype(jnp.bfloat16)                       # halve im2col HBM traffic
    xp = jnp.pad(x, ((0, 0), (padding, padding), (padding, padding), (0, 0)))
    Ho = (H + 2 * padding - dilation * (kh - 1) - 1) // stride + 1
    Wo = (W + 2 * padding - dilation * (kw - 1) - 1) // stride + 1
    if kh == 1 and kw == 1 and stride == 1 and padding == 0:
        a = x.reshape(N * H * W, C)                  # no patch extraction needed
    else:
        cols = []
        for i in range(kh):
            for j in range(kw):
                patch = lax.slice(
                    xp,
                    (0, i * dilation, j * dilation, 0),
                    (N, i * dilation + (Ho - 1) * stride + 1,
                     j * dilation + (Wo - 1) * stride + 1, C),
                    (1, stride, stride, 1))
                cols.append(patch)
        a = jnp.concatenate(cols, axis=-1).reshape(N * Ho * Wo, kh * kw * C)
    b = w.astype(jnp.bfloat16).reshape(kh * kw * C, Cout)
    out = matmul_scale_bias(a, b, scale, bias, relu=relu, out_dtype=out_dtype)
    return out.reshape(N, Ho, Wo, Cout)


# ----------------------------------------------------------------------------
# Glue ops (plain JAX): bilinear resize (align_corners=True) via separable
# one-hot matmuls (no XLA gather), maxpool
# ----------------------------------------------------------------------------
def _interp_matrix(out_size, in_size):
    if out_size == 1:
        pos = jnp.zeros((1,), jnp.float32)
    else:
        pos = jnp.linspace(0.0, float(in_size - 1), out_size)
    i0 = jnp.clip(jnp.floor(pos).astype(jnp.int32), 0, in_size - 1)
    i1 = jnp.clip(i0 + 1, 0, in_size - 1)
    w1 = pos - i0.astype(jnp.float32)
    w0 = 1.0 - w1
    m = (jax.nn.one_hot(i0, in_size, dtype=jnp.float32) * w0[:, None]
         + jax.nn.one_hot(i1, in_size, dtype=jnp.float32) * w1[:, None])
    return m                                           # (out_size, in_size)


def upsample_bilinear_ac(x, out_h, out_w):
    """PyTorch-style bilinear resize with align_corners=True. x: NHWC."""
    N, H, W, C = x.shape
    my = _interp_matrix(out_h, H)
    mx = _interp_matrix(out_w, W)
    xf = x.astype(jnp.float32)
    y = jnp.einsum('oh,nhwc->nowc', my, xf)
    y = jnp.einsum('pw,nowc->nopc', mx, y)
    return y


def maxpool_3x3_s2_p1(x):
    # small op, kept as glue
    neg_inf = jnp.asarray(-jnp.inf, x.dtype)
    return lax.reduce_window(x, neg_inf, lax.max,
                             (1, 3, 3, 1), (1, 2, 2, 1),
                             ((0, 0), (1, 1), (1, 1), (0, 0)))


# ----------------------------------------------------------------------------
# Deterministic parameter construction
# ----------------------------------------------------------------------------
class PGen:
    def __init__(self, key):
        self._key = key
        self._n = 0

    def take(self, shape, scale):
        self._n += 1
        return scale * jax.random.normal(jax.random.fold_in(self._key, self._n),
                                         shape, jnp.float32)


_BN_EPS = 1e-5


def make_cbr(pg, cin, cout, k, stride=1, padding=0, dilation=1,
             conv_bias=True, bn=True, relu=True):
    w = pg.take((k, k, cin, cout), 1.0 / math.sqrt(k * k * cin))
    b = pg.take((cout,), 0.02) if conv_bias else jnp.zeros((cout,), jnp.float32)
    if bn:
        gamma = 1.0 + pg.take((cout,), 0.1)
        beta = pg.take((cout,), 0.1)
        scale = gamma / jnp.sqrt(1.0 + _BN_EPS)   # running stats: mean 0, var 1
        bias = b * scale + beta
    else:
        scale = jnp.ones((cout,), jnp.float32)
        bias = b
    return dict(w=w, scale=scale, bias=bias, stride=stride, padding=padding,
                dilation=dilation, relu=relu)


def apply_cbr(p, x, out_dtype=jnp.bfloat16):
    return conv2d(x, p['w'], p['scale'], p['bias'], stride=p['stride'],
                  padding=p['padding'], dilation=p['dilation'], relu=p['relu'],
                  out_dtype=out_dtype)


def make_bn(pg, c):
    gamma = 1.0 + pg.take((c,), 0.1)
    beta = pg.take((c,), 0.1)
    return dict(scale=gamma / jnp.sqrt(1.0 + _BN_EPS), bias=beta)


# ----------------------------------------------------------------------------
# Context_Exploration_Block  (four 1x1 channel reductions fused into one matmul)
# ----------------------------------------------------------------------------
def make_ceb(pg, cin):
    cs = cin // 4
    return dict(
        cs=cs,
        cr=make_cbr(pg, cin, 4 * cs, 1),           # fused p1..p4 channel reductions
        p1=make_cbr(pg, cs, cs, 1),
        p1_dc=make_cbr(pg, cs, cs, 3, padding=1, dilation=1),
        p2=make_cbr(pg, cs, cs, 3, padding=1),
        p2_dc=make_cbr(pg, cs, cs, 3, padding=2, dilation=2),
        p3=make_cbr(pg, cs, cs, 5, padding=2),
        p3_dc=make_cbr(pg, cs, cs, 3, padding=4, dilation=4),
        p4=make_cbr(pg, cs, cs, 7, padding=3),
        p4_dc=make_cbr(pg, cs, cs, 3, padding=8, dilation=8),
        fusion=make_cbr(pg, cin, cin, 1),
    )


def apply_ceb(p, x):
    cs = p['cs']
    cr = apply_cbr(p['cr'], x)                      # (N,H,W,4*cs), reads x once
    p1_in = cr[..., 0 * cs:1 * cs]
    p1 = apply_cbr(p['p1'], p1_in)
    p1_dc = apply_cbr(p['p1_dc'], p1)
    p2_in = cr[..., 1 * cs:2 * cs] + p1_dc
    p2 = apply_cbr(p['p2'], p2_in)
    p2_dc = apply_cbr(p['p2_dc'], p2)
    p3_in = cr[..., 2 * cs:3 * cs] + p2_dc
    p3 = apply_cbr(p['p3'], p3_in)
    p3_dc = apply_cbr(p['p3_dc'], p3)
    p4_in = cr[..., 3 * cs:4 * cs] + p3_dc
    p4 = apply_cbr(p['p4'], p4_in)
    p4_dc = apply_cbr(p['p4_dc'], p4)
    ce = apply_cbr(p['fusion'],
                   jnp.concatenate([p1_dc, p2_dc, p3_dc, p4_dc], axis=-1))
    return ce


# ----------------------------------------------------------------------------
# CA / SA attention blocks + Positioning
# ----------------------------------------------------------------------------
# TODO(synk): DARConv2d is not defined in the provided source; it is treated
#             here as a standard 1x1 Conv2d (bias=True).  q/k/v are fused into
#             a single 1x1 conv (weights concatenated along Cout).
def make_attn_block(pg, c):
    return dict(
        qkv=make_cbr(pg, c, 3 * c, 1, bn=False, relu=False),
        gamma=jnp.ones((1,), jnp.float32),
    )


def apply_ca(p, x):
    N, H, W, C = x.shape
    qkv = apply_cbr(p['qkv'], x).reshape(N, H * W, 3 * C)
    q = qkv[..., 0 * C:1 * C]
    k = qkv[..., 1 * C:2 * C]
    v = qkv[..., 2 * C:3 * C]
    kT = jnp.transpose(k, (0, 2, 1))                 # (N, C, HW), once in XLA
    out = _ca_attention(kT, q, v)                    # (N, HW, C), lane-dense
    out = out.reshape(N, H, W, C)
    return p['gamma'][0] * out + x


def apply_sa(p, x):
    N, H, W, C = x.shape
    qkv = apply_cbr(p['qkv'], x).reshape(N, H * W, 3 * C)
    q = qkv[..., 0 * C:1 * C]
    k = qkv[..., 1 * C:2 * C]
    v = qkv[..., 2 * C:3 * C]
    kT = jnp.transpose(k, (0, 2, 1))                 # (N, C, HW), once in XLA
    out = _sa_attention(q, kT, v).reshape(N, H, W, C)
    return p['gamma'][0] * out + x


def make_positioning(pg, c):
    return dict(cab=make_attn_block(pg, c),
                sab=make_attn_block(pg, c),
                map=make_cbr(pg, c, 1, 3, padding=1, bn=False, relu=False))


def apply_positioning(p, x):
    cab = apply_ca(p['cab'], x)
    sab = apply_sa(p['sab'], cab)
    m = apply_cbr(p['map'], cab, out_dtype=jnp.float32)
    return sab, m


# ----------------------------------------------------------------------------
# Focus / Focuslast
# ----------------------------------------------------------------------------
def make_focus(pg, ch1, ch2, out_ch):
    return dict(
        up=make_cbr(pg, ch2, ch1, 3, padding=1),
        output_map=make_cbr(pg, ch1, out_ch, 3, padding=1, bn=False, relu=False),
        fp=make_ceb(pg, ch1),
        fn=make_ceb(pg, ch1),
        alpha=jnp.ones((1,), jnp.float32),
        beta=jnp.ones((1,), jnp.float32),
        bn1=make_bn(pg, ch1),
        bn2=make_bn(pg, ch1),
    )


def apply_focus(p, x, y, in_map):
    N, H, W, C = x.shape
    up1 = upsample_bilinear_ac(apply_cbr(p['up'], y), H, W)
    input_map = jax.nn.sigmoid(upsample_bilinear_ac(in_map, H, W))
    f_feat = x.astype(jnp.float32) * input_map
    b_feat = x.astype(jnp.float32) * (1.0 - input_map)
    fp = apply_ceb(p['fp'], f_feat)
    fn = apply_ceb(p['fn'], b_feat)
    # refine1 = relu(bn1(up1 - alpha * fp))    (fused Pallas elementwise)
    s1, b1 = p['bn1']['scale'], p['bn1']['bias']
    refine1 = fused_affine2(up1, fp, s1, -p['alpha'][0] * s1, b1, relu=True)
    # refine2 = relu(bn2(refine1 + beta * fn))
    s2, b2 = p['bn2']['scale'], p['bn2']['bias']
    refine2 = fused_affine2(refine1, fn, s2, p['beta'][0] * s2, b2, relu=True)
    out_map = apply_cbr(p['output_map'], refine2, out_dtype=jnp.float32)
    return refine2, out_map


# ----------------------------------------------------------------------------
# ResNet-50 backbone (synthetic deterministic weights, same architecture)
# ----------------------------------------------------------------------------
def make_bottleneck(pg, inplanes, planes, stride, has_ds):
    return dict(
        c1=make_cbr(pg, inplanes, planes, 1, conv_bias=False),
        c2=make_cbr(pg, planes, planes, 3, stride=stride, padding=1,
                    conv_bias=False),
        c3=make_cbr(pg, planes, planes * 4, 1, conv_bias=False, relu=False),
        ds=(make_cbr(pg, inplanes, planes * 4, 1, stride=stride,
                     conv_bias=False, relu=False) if has_ds else None),
    )


def apply_bottleneck(p, x):
    out = apply_cbr(p['c1'], x)
    out = apply_cbr(p['c2'], out)
    out = apply_cbr(p['c3'], out)
    identity = apply_cbr(p['ds'], x) if p['ds'] is not None else x
    c = out.shape[-1]
    ones = jnp.ones((c,), jnp.float32)
    zeros = jnp.zeros((c,), jnp.float32)
    return fused_affine2(out, identity, ones, ones, zeros, relu=True)


def make_layer(pg, inplanes, planes, blocks, stride):
    layers = [make_bottleneck(pg, inplanes, planes, stride, True)]
    for _ in range(blocks - 1):
        layers.append(make_bottleneck(pg, planes * 4, planes, 1, False))
    return layers


def apply_layer(layers, x):
    for p in layers:
        x = apply_bottleneck(p, x)
    return x


# ----------------------------------------------------------------------------
# daseg
# ----------------------------------------------------------------------------
def make_daseg(key):
    pg = PGen(key)
    return dict(
        conv1=make_cbr(pg, 3, 64, 7, stride=2, padding=3, conv_bias=False),
        layer1=make_layer(pg, 64, 64, 3, 1),
        layer2=make_layer(pg, 256, 128, 4, 2),
        layer3=make_layer(pg, 512, 256, 6, 2),
        layer4=make_layer(pg, 1024, 512, 3, 2),
        positioning=make_positioning(pg, 2048),
        focus3=make_focus(pg, 1024, 2048, 1),
        focus2=make_focus(pg, 512, 1024, 1),
        focus1=make_focus(pg, 256, 512, 1),
        focus0=make_focus(pg, 64, 256, 2),   # Focuslast: 2 output channels
    )


def daseg_forward(params, x_nchw):
    x = jnp.transpose(x_nchw, (0, 2, 3, 1)).astype(jnp.float32)  # NCHW -> NHWC
    H_in, W_in = x_nchw.shape[2], x_nchw.shape[3]

    layer0 = apply_cbr(params['conv1'], x)                 # (N, H/2,  W/2,  64)
    layer1 = apply_layer(params['layer1'], maxpool_3x3_s2_p1(layer0))  # 256
    layer2 = apply_layer(params['layer2'], layer1)         # 512
    layer3 = apply_layer(params['layer3'], layer2)         # 1024
    layer4 = apply_layer(params['layer4'], layer3)         # 2048

    positioning, predict4 = apply_positioning(params['positioning'], layer4)
    focus3, predict3 = apply_focus(params['focus3'], layer3, positioning, predict4)
    focus2, predict2 = apply_focus(params['focus2'], layer2, focus3, predict3)
    focus1, predict1 = apply_focus(params['focus1'], layer1, focus2, predict2)
    focus0, predict0 = apply_focus(params['focus0'], layer0, focus1, predict1)

    preds = []
    for p in (predict4, predict3, predict2, predict1, predict0):
        p = upsample_bilinear_ac(p, H_in, W_in)           # bilinear, align_corners=True
        preds.append(jnp.transpose(p, (0, 3, 1, 2)))      # back to NCHW
    return tuple(preds)


# ----------------------------------------------------------------------------
if __name__ == "__main__":
    key = jax.random.PRNGKey(0)
    params = make_daseg(jax.random.fold_in(key, 1))
    # Small input consistent with the module: divisible by 32 so the ResNet
    # pyramid and the x2 upsampling chain line up (64x64 -> 32,16,8,4,2).
    x = jax.random.normal(jax.random.fold_in(key, 2), (2, 3, 64, 64), jnp.float32)

    preds = daseg_forward(params, x)
    preds = jax.block_until_ready(preds)

    assert preds[0].shape == (2, 1, 64, 64)
    assert preds[1].shape == (2, 1, 64, 64)
    assert preds[2].shape == (2, 1, 64, 64)
    assert preds[3].shape == (2, 1, 64, 64)
    assert preds[4].shape == (2, 2, 64, 64)
    assert all(bool(jnp.all(jnp.isfinite(p))) for p in preds)
    print("KERNEL_OK")
</pallas_src>

<mosaic_0001>
module attributes {stable_mosaic.version = 11 : i64} {
  func.func @_mm_kernel(%arg0: i32, %arg1: i32, %arg2: i32, %arg3: memref<256x256xbf16, #tpu.memory_space<vmem>>, %arg4: memref<256x128xbf16, #tpu.memory_space<vmem>>, %arg5: memref<1x128xf32, #tpu.memory_space<vmem>>, %arg6: memref<1x128xf32, #tpu.memory_space<vmem>>, %arg7: memref<256x128xbf16, #tpu.memory_space<vmem>>, %arg8: memref<256x128xf32, #tpu.memory_space<vmem>>) attributes {dimension_semantics = [#tpu.dimension_semantics<parallel>, #tpu.dimension_semantics<parallel>, #tpu.dimension_semantics<arbitrary>], iteration_bounds = array<i64: 8, 1, 1>, scalar_prefetch = 0 : i64, scratch_operands = 1 : i64, tpu.core_type = #tpu.core_type<tc>, window_params = [{transform_indices = @transform_0, window_bounds = array<i64: 256, 256>}, {transform_indices = @transform_1, window_bounds = array<i64: 256, 128>}, {transform_indices = @transform_2, window_bounds = array<i64: 1, 128>}, {transform_indices = @transform_3, window_bounds = array<i64: 1, 128>}, {transform_indices = @transform_4, window_bounds = array<i64: 256, 128>}]} {
    %c0_i32 = arith.constant 0 : i32
    %0 = arith.cmpi eq, %arg2, %c0_i32 : i32
    %1 = arith.extui %0 : i1 to i32
    %c0_i32_0 = arith.constant 0 : i32
    %2 = arith.cmpi ne, %1, %c0_i32_0 : i32
    scf.if %2 {
      %cst_10 = arith.constant 0.000000e+00 : f32
      %12 = vector.broadcast %cst_10 : f32 to vector<256x128xf32>
      %c0_11 = arith.constant 0 : index
      %c0_12 = arith.constant 0 : index
      %13 = vector.load %arg8[%c0_11, %c0_12] : memref<256x128xf32, #tpu.memory_space<vmem>>, vector<256x128xf32>
      tpu.vector_store %arg8[%c0_11, %c0_12], %12 {strides = array<i32>} : memref<256x128xf32, #tpu.memory_space<vmem>>, vector<256x128xf32>,
    } else {
    }
    %c0 = arith.constant 0 : index
    %c0_1 = arith.constant 0 : index
    %3 = vector.load %arg8[%c0, %c0_1] : memref<256x128xf32, #tpu.memory_space<vmem>>, vector<256x128xf32>
    %c0_2 = arith.constant 0 : index
    %c0_3 = arith.constant 0 : index
    %4 = vector.load %arg3[%c0_2, %c0_3] : memref<256x256xbf16, #tpu.memory_space<vmem>>, vector<256x256xbf16>
    %c0_4 = arith.constant 0 : index
    %c0_5 = arith.constant 0 : index
    %5 = vector.load %arg4[%c0_4, %c0_5] : memref<256x128xbf16, #tpu.memory_space<vmem>>, vector<256x128xbf16>
    %cst = arith.constant dense<0.000000e+00> : vector<256x128xf32>
    %6 = tpu.matmul %4, %5, %cst {dimension_numbers = #tpu.dot_dimension_numbers<[1], [0], [0], [1], [0, 0, 1, 1], [], []>} : vector<256x256xbf16>, vector<256x128xbf16>, vector<256x128xf32> -> vector<256x128xf32>
    %7 = arith.addf %3, %6 : vector<256x128xf32>
    %c0_6 = arith.constant 0 : index
    %c0_7 = arith.constant 0 : index
    %8 = vector.load %arg8[%c0_6, %c0_7] : memref<256x128xf32, #tpu.memory_space<vmem>>, vector<256x128xf32>
    tpu.vector_store %arg8[%c0_6, %c0_7], %7 {strides = array<i32>} : memref<256x128xf32, #tpu.memory_space<vmem>>, vector<256x128xf32>,
    %c0_i32_8 = arith.constant 0 : i32
    %9 = arith.cmpi eq, %arg2, %c0_i32_8 : i32
    %10 = arith.extui %9 : i1 to i32
    %c0_i32_9 = arith.constant 0 : i32
    %11 = arith.cmpi ne, %10, %c0_i32_9 : i32
    scf.if %11 {
      %c0_10 = arith.constant 0 : index
      %c0_11 = arith.constant 0 : index
      %12 = vector.load %arg8[%c0_10, %c0_11] : memref<256x128xf32, #tpu.memory_space<vmem>>, vector<256x128xf32>
      %c0_12 = arith.constant 0 : index
      %c0_13 = arith.constant 0 : index
      %13 = vector.load %arg5[%c0_12, %c0_13] : memref<1x128xf32, #tpu.memory_space<vmem>>, vector<1x128xf32>
      %14 = vector.broadcast %13 : vector<1x128xf32> to vector<256x128xf32>
      %15 = arith.mulf %12, %14 : vector<256x128xf32>
      %c0_14 = arith.constant 0 : index
      %c0_15 = arith.constant 0 : index
      %16 = vector.load %arg6[%c0_14, %c0_15] : memref<1x128xf32, #tpu.memory_space<vmem>>, vector<1x128xf32>
      %17 = vector.broadcast %16 : vector<1x128xf32> to vector<256x128xf32>
      %18 = arith.addf %15, %17 : vector<256x128xf32>
      %cst_16 = arith.constant 0.000000e+00 : f32
      %19 = vector.broadcast %cst_16 : f32 to vector<256x128xf32>
      %20 = arith.maximumf %18, %19 : vector<256x128xf32>
      %21 = arith.truncf %20 : vector<256x128xf32> to vector<256x128xbf16>
      %c0_17 = arith.constant 0 : index
      %c0_18 = arith.constant 0 : index
      %22 = vector.load %arg7[%c0_17, %c0_18] : memref<256x128xbf16, #tpu.memory_space<vmem>>, vector<256x128xbf16>
      tpu.vector_store %arg7[%c0_17, %c0_18], %21 {strides = array<i32>} : memref<256x128xbf16, #tpu.memory_space<vmem>>, vector<256x128xbf16>,
    } else {
    }
    return
  }
  func.func @transform_0(%arg0: i32, %arg1: i32, %arg2: i32) -> (i32, i32) {
    %c0_i32 = arith.constant 0 : i32
    return %arg0, %arg2 : i32, i32
  }
  func.func @transform_1(%arg0: i32, %arg1: i32, %arg2: i32) -> (i32, i32) {
    %c0_i32 = arith.constant 0 : i32
    return %arg2, %arg1 : i32, i32
  }
  func.func @transform_2(%arg0: i32, %arg1: i32, %arg2: i32) -> (i32, i32) {
    %c0_i32 = arith.constant 0 : i32
    %c0_i32_0 = arith.constant 0 : i32
    return %c0_i32, %arg1 : i32, i32
  }
  func.func @transform_3(%arg0: i32, %arg1: i32, %arg2: i32) -> (i32, i32) {
    %c0_i32 = arith.constant 0 : i32
    %c0_i32_0 = arith.constant 0 : i32
    return %c0_i32, %arg1 : i32, i32
  }
  func.func @transform_4(%arg0: i32, %arg1: i32, %arg2: i32) -> (i32, i32) {
    %c0_i32 = arith.constant 0 : i32
    return %arg0, %arg1 : i32, i32
  }
}

</mosaic_0001>

<bundles_post_ra>
// kernel: matmul_scale_bias.1
= control target key start
LH: loop header
LB: loop body
LE: loop exit
PB: predicated region body
PF: predicated region fallthrough
CT: control target
= control target key end

     0   :  { %s1843_s15 = smov 0   ;;  %s1845_s16 = smov 0   ;;  %s2054_s0 = inlined_call_operand.vmem [shape: bf16[2048,256], index: 0, kind: input, shape index: {}]   ;;  %s2055_s1 = inlined_call_operand.vmem [shape: bf16[256,128], index: 1, kind: input, shape index: {}]   ;;  %s2056_s2 = inlined_call_operand.vmem [shape: f32[1,128], index: 2, kind: input, shape index: {}]   ;;  %s2057_s3 = inlined_call_operand.vmem [shape: f32[1,128], index: 3, kind: input, shape index: {}]   ;;  %s2058_s4 = inlined_call_operand.vmem [shape: bf16[2048,128], index: 4, kind: output, shape index: {}]  }
   0x1   :  { %s1847_s17 = smov 0  }
   0x2 LB: > { %s33_s18 = sadd.s32 1, %s1812_s16  ;;  %p1360_p0 = scmp.ge.s32.totalorder %s1816_s17, 1  ;;  %s1816_s17 = sphi %s1847_s17, %s14_s17   ;;  %s1812_s16 = sphi %s1845_s16, %s2060_s16   ;;  %s1808_s15 = sphi %s1843_s15, %s2059_s15  }
   0x3   : > { %p35_p1 = scmp.ge.s32.totalorder %s33_s18, 8  ;;  %p224_p2 = scmp.lt.s32.totalorder %s1816_s17, 9 }
   0x5   : > { %s2062_s18 = smov (%p35_p1, %s33_s18), 0  ;;  %p225_p3 = pnand %p1360_p0, %p224_p2 }
   0x6   : > { %s1361_s21 = sshll.u32 (!%p225_p3), %s1808_s15, 5 }
   0x7   : > { %228 = sbr.rel (%p225_p3) target bundleno = 311 (0x137), region = 36  ;;  %p274_p4 = scmp.lt.s32.totalorder (!%p225_p3), %s1361_s21, 255 }
   0xc   : > { %v1730_v0 = vld [vmem:[%s2055_s1 + $0x78] sm:$0xff]   ;;  %v1732_v2 = vld [vmem:[%s2055_s1 + $0x70] sm:$0xff]   ;;  %v1734_v4 = vld [vmem:[%s2055_s1 + $0x68] sm:$0xff]   ;;  %s2064_s21 = smov (!%p274_p4, %s1361_s21), 255 }
   0xd   : > { %v1731_v1 = vld [vmem:[%s2055_s1 + $0x38] sm:$0xff]   ;;  %1578 = vmatprep.subr.bf16.mxu0 %v1730_v0  ;;  %1690 = vmatprep.subr.bf16.mxu1 %v1730_v0  ;;  %v1733_v3 = vld [vmem:[%s2055_s1 + $0x30] sm:$0xff]   ;;  %v1735_v5 = vld [vmem:[%s2055_s1 + $0x28] sm:$0xff]   ;;  %s1450_s10 = sshll.u32 %s2064_s21, 3  ;;  %s1365_s12 = sshll.u32 %s2064_s21, 2 }
   0xe   : > { %1579 = vmatpush3.bf16.msra.mxu0 %v1731_v1  ;;  %1698 = vmatpush3.bf16.msra.mxu1 %v1731_v1  ;;  %v1736_v6 = vld [vmem:[%s2055_s1 + $0x60] sm:$0xff]   ;;  %v1738_v8 = vld [vmem:[%s2055_s1 + $0x58] sm:$0xff]   ;;  %s1894_s15 = scalar_lea.vmem %s2054_s0, %s1450_s10  ;;  %v1740_v10 = vld [vmem:[%s2055_s1 + $0x50] sm:$0xff]  }
   0xf   : > { %1580 = vmatprep.subr.bf16.mxu0 %v1732_v2  ;;  %1691 = vmatprep.subr.bf16.mxu1 %v1732_v2  ;;  %v1737_v7 = vld [vmem:[%s2055_s1 + $0x20] sm:$0xff]   ;;  %v1739_v9 = vld [vmem:[%s2055_s1 + $0x18] sm:$0xff]   ;;  %v1741_v13 = vld [vmem:[%s2055_s1 + $0x10] sm:$0xff]  }
  0x10   : > { %v1748_v11 = vld [vmem:[%s1894_s15 + $0x4] ss:$8 sps:$4 sm:$0xff]   ;;  %v1746_v18 = vld [vmem:[%s1894_s15] ss:$8 sps:$4 sm:$0xff]   ;;  %v1752_v20 = vld [vmem:[%s1894_s15 + $0x14] ss:$8 sps:$4 sm:$0xff]  }
  0x11   : > { %v1751_v12 = vld [vmem:[%s1894_s15 + $0x84] ss:$8 sps:$4 sm:$0xff]   ;;  %729 = vmatprep.mubr.bf16.mxu0 %v1748_v11  ;;  %v1749_v19 = vld [vmem:[%s1894_s15 + $0x80] ss:$8 sps:$4 sm:$0xff]   ;;  %v1754_v21 = vld [vmem:[%s1894_s15 + $0x94] ss:$8 sps:$4 sm:$0xff]  }
  0x12   : > { %1581 = vmatpush3.bf16.msra.mxu0 %v1733_v3  ;;  %1699 = vmatpush3.bf16.msra.mxu1 %v1733_v3  ;;  %v1742_v14 = vld [vmem:[%s2055_s1 + $0x48] sm:$0xff]   ;;  %v1744_v16 = vld [vmem:[%s2055_s1 + $0x40] sm:$0xff]   ;;  %v1756_v22 = vld [vmem:[%s1894_s15 + $0x10] ss:$8 sps:$4 sm:$0xff]  }
  0x13   : > { %1582 = vmatprep.subr.bf16.mxu0 %v1734_v4  ;;  %1692 = vmatprep.subr.bf16.mxu1 %v1734_v4  ;;  %v1743_v15 = vld [vmem:[%s2055_s1 + $0x8] sm:$0xff]   ;;  %v1745_v17 = vld [vmem:[%s2055_s1] sm:$0xff]   ;;  %v1757_v23 = vld [vmem:[%s1894_s15 + $0x90] ss:$8 sps:$4 sm:$0xff]  }
  0x14   : > { %793 = vmatprep.mubr.bf16.mxu1 %v1751_v12  ;;  %v1758_v24 = vld [vmem:[%s1894_s15 + $0x24] ss:$8 sps:$4 sm:$0xff]   ;;  %v1762_v26 = vld [vmem:[%s1894_s15 + $0x20] ss:$8 sps:$4 sm:$0xff]   ;;  %v1764_v28 = vld [vmem:[%s1894_s15 + $0x34] ss:$8 sps:$4 sm:$0xff]  }
  0x15   : > { %v1760_v25 = vld [vmem:[%s1894_s15 + $0xa4] ss:$8 sps:$4 sm:$0xff]   ;;  %v1763_v27 = vld [vmem:[%s1894_s15 + $0xa0] ss:$8 sps:$4 sm:$0xff]   ;;  %v1766_v29 = vld [vmem:[%s1894_s15 + $0xb4] ss:$8 sps:$4 sm:$0xff]  }
  0x16   : > { %1583 = vmatpush3.bf16.msra.mxu0 %v1735_v5  ;;  %1700 = vmatpush3.bf16.msra.mxu1 %v1735_v5  ;;  %v1768_v30 = vld [vmem:[%s1894_s15 + $0x30] ss:$8 sps:$4 sm:$0xff]   ;;  %v1770_v32 = vld [vmem:[%s1894_s15 + $0x44] ss:$8 sps:$4 sm:$0xff]   ;;  %v1774_v34 = vld [vmem:[%s1894_s15 + $0x40] ss:$8 sps:$4 sm:$0xff]  }
  0x17   : > { %1584 = vmatprep.subr.bf16.mxu0 %v1736_v6  ;;  %1693 = vmatprep.subr.bf16.mxu1 %v1736_v6  ;;  %v1769_v31 = vld [vmem:[%s1894_s15 + $0xb0] ss:$8 sps:$4 sm:$0xff]   ;;  %v1772_v33 = vld [vmem:[%s1894_s15 + $0xc4] ss:$8 sps:$4 sm:$0xff]   ;;  %v1775_v35 = vld [vmem:[%s1894_s15 + $0xc0] ss:$8 sps:$4 sm:$0xff]  }
  0x18   : > { %v1776_v36 = vld [vmem:[%s1894_s15 + $0x54] ss:$8 sps:$4 sm:$0xff]   ;;  %v1780_v38 = vld [vmem:[%s1894_s15 + $0x50] ss:$8 sps:$4 sm:$0xff]   ;;  %v1782_v40 = vld [vmem:[%s1894_s15 + $0x64] ss:$8 sps:$4 sm:$0xff]  }
  0x19   : > { %v1778_v37 = vld [vmem:[%s1894_s15 + $0xd4] ss:$8 sps:$4 sm:$0xff]   ;;  %v1781_v39 = vld [vmem:[%s1894_s15 + $0xd0] ss:$8 sps:$4 sm:$0xff]   ;;  %v1784_v41 = vld [vmem:[%s1894_s15 + $0xe4] ss:$8 sps:$4 sm:$0xff]  }
  0x1a   : > { %1585 = vmatpush3.bf16.msra.mxu0 %v1737_v7  ;;  %1701 = vmatpush3.bf16.msra.mxu1 %v1737_v7  ;;  %v1786_v42 = vld [vmem:[%s1894_s15 + $0x60] ss:$8 sps:$4 sm:$0xff]   ;;  %v1788_v44 = vld [vmem:[%s1894_s15 + $0x74] ss:$8 sps:$4 sm:$0xff]   ;;  %v1792_v46 = vld [vmem:[%s1894_s15 + $0x70] ss:$8 sps:$4 sm:$0xff]  }
  0x1b   : > { %1586 = vmatprep.subr.bf16.mxu0 %v1738_v8  ;;  %1694 = vmatprep.subr.bf16.mxu1 %v1738_v8  ;;  %v1787_v43 = vld [vmem:[%s1894_s15 + $0xe0] ss:$8 sps:$4 sm:$0xff]   ;;  %v1790_v45 = vld [vmem:[%s1894_s15 + $0xf4] ss:$8 sps:$4 sm:$0xff]   ;;  %v1793_v47 = vld [vmem:[%s1894_s15 + $0xf0] ss:$8 sps:$4 sm:$0xff]   ;;  %s1971_s15 = scalar_lea.vmem %s2058_s4, %s1365_s12 }
  0x1c   : > { %v1952_v51 = vld [vmem:[%s2056_s2] ss:$0 sm:$0xff] }
  0x1d   : > { %v1959_v59 = vld [vmem:[%s2057_s3] ss:$0 sm:$0xff] }
  0x1e   : > { %1587 = vmatpush3.bf16.msra.mxu0 %v1739_v9  ;;  %1702 = vmatpush3.bf16.msra.mxu1 %v1739_v9 }
  0x1f   : > { %1588 = vmatprep.subr.bf16.mxu0 %v1740_v10  ;;  %1695 = vmatprep.subr.bf16.mxu1 %v1740_v10 }
  0x22   : > { %1589 = vmatpush3.bf16.msra.mxu0 %v1741_v13  ;;  %1703 = vmatpush3.bf16.msra.mxu1 %v1741_v13 }
  0x23   : > { %1590 = vmatprep.subr.bf16.mxu0 %v1742_v14  ;;  %1696 = vmatprep.subr.bf16.mxu1 %v1742_v14 }
  0x26   : > { %1591 = vmatpush3.bf16.msra.mxu0 %v1743_v15  ;;  %1704 = vmatpush3.bf16.msra.mxu1 %v1743_v15 }
  0x27   : > { %1592 = vmatprep.subr.bf16.mxu0 %v1744_v16  ;;  %1697 = vmatprep.subr.bf16.mxu1 %v1744_v16 }
  0x2a   : > { %1593 = vmatpush3.bf16.msra.mxu0 %v1745_v17  ;;  %1705 = vmatpush3.bf16.msra.mxu1 %v1745_v17 }
  0x2d   : > { %730 = vmatmul.mubr.bf16.vlgmr.msra.gmra.mxu0 %v1746_v18  ;;  %794 = vmatmul.mubr.bf16.vlgmr.msra.gmra.mxu1 %v1749_v19 }
  0x2e   : > { %737 = vmatprep.mubr.bf16.mxu0 %v1752_v20  ;;  %801 = vmatprep.mubr.bf16.mxu1 %v1754_v21 }
  0x35   : > { %738 = vmatmul.mubr.bf16.gmra.mxu0 %v1756_v22  ;;  %802 = vmatmul.mubr.bf16.gmra.mxu1 %v1757_v23 }
  0x36   : > { %745 = vmatprep.mubr.bf16.mxu0 %v1758_v24  ;;  %809 = vmatprep.mubr.bf16.mxu1 %v1760_v25 }
  0x3d   : > { %746 = vmatmul.mubr.bf16.gmra.mxu0 %v1762_v26  ;;  %810 = vmatmul.mubr.bf16.gmra.mxu1 %v1763_v27 }
  0x3e   : > { %753 = vmatprep.mubr.bf16.mxu0 %v1764_v28  ;;  %817 = vmatprep.mubr.bf16.mxu1 %v1766_v29 }
  0x45   : > { %754 = vmatmul.mubr.bf16.gmra.mxu0 %v1768_v30  ;;  %818 = vmatmul.mubr.bf16.gmra.mxu1 %v1769_v31 }
  0x46   : > { %761 = vmatprep.mubr.bf16.mxu0 %v1770_v32  ;;  %825 = vmatprep.mubr.bf16.mxu1 %v1772_v33 }
  0x4d   : > { %762 = vmatmul.mubr.bf16.gmra.mxu0 %v1774_v34  ;;  %826 = vmatmul.mubr.bf16.gmra.mxu1 %v1775_v35 }
  0x4e   : > { %769 = vmatprep.mubr.bf16.mxu0 %v1776_v36  ;;  %833 = vmatprep.mubr.bf16.mxu1 %v1778_v37 }
  0x55   : > { %770 = vmatmul.mubr.bf16.gmra.mxu0 %v1780_v38  ;;  %834 = vmatmul.mubr.bf16.gmra.mxu1 %v1781_v39 }
  0x56   : > { %777 = vmatprep.mubr.bf16.mxu0 %v1782_v40  ;;  %841 = vmatprep.mubr.bf16.mxu1 %v1784_v41 }
  0x5d   : > { %778 = vmatmul.mubr.bf16.gmra.mxu0 %v1786_v42  ;;  %842 = vmatmul.mubr.bf16.gmra.mxu1 %v1787_v43 }
  0x5e   : > { %785 = vmatprep.mubr.bf16.mxu0 %v1788_v44  ;;  %849 = vmatprep.mubr.bf16.mxu1 %v1790_v45 }
  0x65   : > { %786 = vmatmul.mubr.bf16.gmra.mxu0 %v1792_v46  ;;  %850 = vmatmul.mubr.bf16.gmra.mxu1 %v1793_v47 }
  0xed   : > { %v1594_v48 = vpop.f32.mrf.mxu0  ;;  %v1642_v49 = vpop.f32.mrf.mxu1 }
  0xef   : > { %v1595_v50 = vpop.f32.mrf.mxu0  ;;  %v1643_v52 = vpop.f32.mrf.mxu1 }
  0xf0   : > { %v1596_v53 = vadd.f32 %v1595_v50, %v1594_v48  ;;  %v1644_v54 = vadd.f32 %v1643_v52, %v1642_v49 }
  0xf1   : > { %v1597_v55 = vpop.f32.mrf.mxu0  ;;  %v1645_v56 = vpop.f32.mrf.mxu1 }
  0xf2   : > { %v964_v57 = vmul.f32 %v1596_v53, %v1952_v51  ;;  %v980_v58 = vmul.f32 %v1644_v54, %v1952_v51 }
  0xf3   : > { %v1598_v60 = vpop.f32.mrf.mxu0  ;;  %v1646_v61 = vpop.f32.mrf.mxu1 }
  0xf4   : > { %v1599_v62 = vadd.f32 %v1598_v60, %v1597_v55  ;;  %v1647_v63 = vadd.f32 %v1646_v61, %v1645_v56  ;;  %v1003_v2 = vadd.f32 %v1959_v59, %v964_v57  ;;  %v1019_v3 = vadd.f32 %v1959_v59, %v980_v58 }
  0xf5   : > { %v1600_v0 = vpop.f32.mrf.mxu0  ;;  %v1648_v1 = vpop.f32.mrf.mxu1 }
  0xf6   : > { %v965_v4 = vmul.f32 %v1599_v62, %v1952_v51  ;;  %v981_v5 = vmul.f32 %v1647_v63, %v1952_v51  ;;  %v1035_v14 = vmax.f32 %v1003_v2, 0.0  ;;  %v1051_v15 = vmax.f32 %v1019_v3, 0.0 }
  0xf7   : > { %v1601_v6 = vpop.f32.mrf.mxu0  ;;  %v1649_v7 = vpop.f32.mrf.mxu1 }
  0xf8   : > { %v1004_v8 = vadd.f32 %v1959_v59, %v965_v4  ;;  %v1020_v9 = vadd.f32 %v1959_v59, %v981_v5  ;;  %v1602_v10 = vadd.f32 %v1601_v6, %v1600_v0  ;;  %v1650_v11 = vadd.f32 %v1649_v7, %v1648_v1 }
  0xf9   : > { %v1603_v12 = vpop.f32.mrf.mxu0  ;;  %v1651_v13 = vpop.f32.mrf.mxu1 }
  0xfa   : > { %v1036_v16 = vmax.f32 %v1004_v8, 0.0  ;;  %v1052_v17 = vmax.f32 %v1020_v9, 0.0  ;;  %v966_v18 = vmul.f32 %v1602_v10, %v1952_v51  ;;  %v982_v19 = vmul.f32 %v1650_v11, %v1952_v51 }
  0xfb   : > { %v1604_v20 = vpop.f32.mrf.mxu0  ;;  %v1652_v21 = vpop.f32.mrf.mxu1 }
  0xfc   : > { %v1486_v22 = vpack.c.bf16 %v1036_v16, %v1035_v14  ;;  %v1526_v23 = vpack.c.bf16 %v1052_v17, %v1051_v15  ;;  %v1605_v24 = vadd.f32 %v1604_v20, %v1603_v12  ;;  %v1653_v25 = vadd.f32 %v1652_v21, %v1651_v13 }
  0xfd   : > { %v1606_v26 = vpop.f32.mrf.mxu0  ;;  %v1654_v27 = vpop.f32.mrf.mxu1  ;;  %v1005_v28 = vadd.f32 %v1959_v59, %v966_v18  ;;  %v1021_v29 = vadd.f32 %v1959_v59, %v982_v19 }
  0xfe   : > { %1487 = vst [vmem:[%s1971_s15] sm:$0xff] %v1486_v22   ;;  %1570 = vst [vmem:[%s1971_s15 + $0x40] sm:$0xff] %v1526_v23   ;;  %v967_v30 = vmul.f32 %v1605_v24, %v1952_v51  ;;  %v983_v31 = vmul.f32 %v1653_v25, %v1952_v51 }
  0xff   : > { %v1607_v32 = vpop.f32.mrf.mxu0  ;;  %v1655_v33 = vpop.f32.mrf.mxu1  ;;  %v1037_v42 = vmax.f32 %v1005_v28, 0.0  ;;  %v1053_v43 = vmax.f32 %v1021_v29, 0.0 }
 0x100   : > { %v1608_v34 = vadd.f32 %v1607_v32, %v1606_v26  ;;  %v1656_v35 = vadd.f32 %v1655_v33, %v1654_v27  ;;  %v1006_v36 = vadd.f32 %v1959_v59, %v967_v30  ;;  %v1022_v37 = vadd.f32 %v1959_v59, %v983_v31 }
 0x101   : > { %v1609_v38 = vpop.f32.mrf.mxu0  ;;  %v1657_v39 = vpop.f32.mrf.mxu1 }
 0x102   : > { %v968_v40 = vmul.f32 %v1608_v34, %v1952_v51  ;;  %v984_v41 = vmul.f32 %v1656_v35, %v1952_v51  ;;  %v1038_v44 = vmax.f32 %v1006_v36, 0.0  ;;  %v1054_v45 = vmax.f32 %v1022_v37, 0.0 }
 0x103   : > { %v1610_v46 = vpop.f32.mrf.mxu0  ;;  %v1658_v47 = vpop.f32.mrf.mxu1 }
 0x104   : > { %v1611_v48 = vadd.f32 %v1610_v46, %v1609_v38  ;;  %v1659_v49 = vadd.f32 %v1658_v47, %v1657_v39  ;;  %v1491_v50 = vpack.c.bf16 %v1038_v44, %v1037_v42  ;;  %v1531_v52 = vpack.c.bf16 %v1054_v45, %v1053_v43 }
 0x105   : > { %v1612_v53 = vpop.f32.mrf.mxu0  ;;  %v1660_v54 = vpop.f32.mrf.mxu1  ;;  %v1007_v55 = vadd.f32 %v1959_v59, %v968_v40  ;;  %v1023_v56 = vadd.f32 %v1959_v59, %v984_v41 }
 0x106   : > { %v969_v57 = vmul.f32 %v1611_v48, %v1952_v51  ;;  %v985_v58 = vmul.f32 %v1659_v49, %v1952_v51  ;;  %1563 = vst [vmem:[%s1971_s15 + $0x8] sm:$0xff] %v1491_v50   ;;  %1571 = vst [vmem:[%s1971_s15 + $0x48] sm:$0xff] %v1531_v52  }
 0x107   : > { %v1613_v60 = vpop.f32.mrf.mxu0  ;;  %v1661_v61 = vpop.f32.mrf.mxu1  ;;  %v1039_v4 = vmax.f32 %v1007_v55, 0.0  ;;  %v1055_v5 = vmax.f32 %v1023_v56, 0.0 }
 0x108   : > { %v1008_v62 = vadd.f32 %v1959_v59, %v969_v57  ;;  %v1024_v63 = vadd.f32 %v1959_v59, %v985_v58  ;;  %v1614_v0 = vadd.f32 %v1613_v60, %v1612_v53  ;;  %v1662_v1 = vadd.f32 %v1661_v61, %v1660_v54 }
 0x109   : > { %v1615_v2 = vpop.f32.mrf.mxu0  ;;  %v1663_v3 = vpop.f32.mrf.mxu1 }
 0x10a   : > { %v1040_v6 = vmax.f32 %v1008_v62, 0.0  ;;  %v1056_v7 = vmax.f32 %v1024_v63, 0.0  ;;  %v970_v8 = vmul.f32 %v1614_v0, %v1952_v51  ;;  %v986_v9 = vmul.f32 %v1662_v1, %v1952_v51 }
 0x10b   : > { %v1616_v10 = vpop.f32.mrf.mxu0  ;;  %v1664_v11 = vpop.f32.mrf.mxu1 }
 0x10c   : > { %v1496_v12 = vpack.c.bf16 %v1040_v6, %v1039_v4  ;;  %v1536_v13 = vpack.c.bf16 %v1056_v7, %v1055_v5  ;;  %v1617_v14 = vadd.f32 %v1616_v10, %v1615_v2  ;;  %v1665_v15 = vadd.f32 %v1664_v11, %v1663_v3 }
 0x10d   : > { %v1618_v16 = vpop.f32.mrf.mxu0  ;;  %v1666_v17 = vpop.f32.mrf.mxu1  ;;  %v1009_v18 = vadd.f32 %v1959_v59, %v970_v8  ;;  %v1025_v19 = vadd.f32 %v1959_v59, %v986_v9 }
 0x10e   : > { %1564 = vst [vmem:[%s1971_s15 + $0x10] sm:$0xff] %v1496_v12   ;;  %1572 = vst [vmem:[%s1971_s15 + $0x50] sm:$0xff] %v1536_v13   ;;  %v971_v20 = vmul.f32 %v1617_v14, %v1952_v51  ;;  %v987_v21 = vmul.f32 %v1665_v15, %v1952_v51 }
 0x10f   : > { %v1619_v22 = vpop.f32.mrf.mxu0  ;;  %v1667_v23 = vpop.f32.mrf.mxu1  ;;  %v1041_v32 = vmax.f32 %v1009_v18, 0.0  ;;  %v1057_v33 = vmax.f32 %v1025_v19, 0.0 }
 0x110   : > { %v1620_v24 = vadd.f32 %v1619_v22, %v1618_v16  ;;  %v1668_v25 = vadd.f32 %v1667_v23, %v1666_v17  ;;  %v1010_v26 = vadd.f32 %v1959_v59, %v971_v20  ;;  %v1026_v27 = vadd.f32 %v1959_v59, %v987_v21 }
 0x111   : > { %v1621_v28 = vpop.f32.mrf.mxu0  ;;  %v1669_v29 = vpop.f32.mrf.mxu1 }
 0x112   : > { %v972_v30 = vmul.f32 %v1620_v24, %v1952_v51  ;;  %v988_v31 = vmul.f32 %v1668_v25, %v1952_v51  ;;  %v1042_v34 = vmax.f32 %v1010_v26, 0.0  ;;  %v1058_v35 = vmax.f32 %v1026_v27, 0.0 }
 0x113   : > { %v1622_v36 = vpop.f32.mrf.mxu0  ;;  %v1670_v37 = vpop.f32.mrf.mxu1 }
 0x114   : > { %v1623_v38 = vadd.f32 %v1622_v36, %v1621_v28  ;;  %v1671_v39 = vadd.f32 %v1670_v37, %v1669_v29  ;;  %v1501_v40 = vpack.c.bf16 %v1042_v34, %v1041_v32  ;;  %v1541_v41 = vpack.c.bf16 %v1058_v35, %v1057_v33 }
 0x115   : > { %v1624_v42 = vpop.f32.mrf.mxu0  ;;  %v1672_v43 = vpop.f32.mrf.mxu1  ;;  %v1011_v44 = vadd.f32 %v1959_v59, %v972_v30  ;;  %v1027_v45 = vadd.f32 %v1959_v59, %v988_v31 }
 0x116   : > { %v973_v46 = vmul.f32 %v1623_v38, %v1952_v51  ;;  %v989_v47 = vmul.f32 %v1671_v39, %v1952_v51  ;;  %1565 = vst [vmem:[%s1971_s15 + $0x18] sm:$0xff] %v1501_v40   ;;  %1573 = vst [vmem:[%s1971_s15 + $0x58] sm:$0xff] %v1541_v41  }
 0x117   : > { %v1625_v48 = vpop.f32.mrf.mxu0  ;;  %v1673_v49 = vpop.f32.mrf.mxu1  ;;  %v1043_v57 = vmax.f32 %v1011_v44, 0.0  ;;  %v1059_v58 = vmax.f32 %v1027_v45, 0.0 }
 0x118   : > { %v1012_v50 = vadd.f32 %v1959_v59, %v973_v46  ;;  %v1028_v52 = vadd.f32 %v1959_v59, %v989_v47  ;;  %v1626_v53 = vadd.f32 %v1625_v48, %v1624_v42  ;;  %v1674_v54 = vadd.f32 %v1673_v49, %v1672_v43 }
 0x119   : > { %v1627_v55 = vpop.f32.mrf.mxu0  ;;  %v1675_v56 = vpop.f32.mrf.mxu1 }
 0x11a   : > { %v1044_v60 = vmax.f32 %v1012_v50, 0.0  ;;  %v1060_v61 = vmax.f32 %v1028_v52, 0.0  ;;  %v974_v62 = vmul.f32 %v1626_v53, %v1952_v51  ;;  %v990_v63 = vmul.f32 %v1674_v54, %v1952_v51 }
 0x11b   : > { %v1628_v0 = vpop.f32.mrf.mxu0  ;;  %v1676_v1 = vpop.f32.mrf.mxu1 }
 0x11c   : > { %v1506_v2 = vpack.c.bf16 %v1044_v60, %v1043_v57  ;;  %v1546_v3 = vpack.c.bf16 %v1060_v61, %v1059_v58  ;;  %v1629_v4 = vadd.f32 %v1628_v0, %v1627_v55  ;;  %v1677_v5 = vadd.f32 %v1676_v1, %v1675_v56 }
 0x11d   : > { %v1630_v6 = vpop.f32.mrf.mxu0  ;;  %v1678_v7 = vpop.f32.mrf.mxu1  ;;  %v1013_v8 = vadd.f32 %v1959_v59, %v974_v62  ;;  %v1029_v9 = vadd.f32 %v1959_v59, %v990_v63 }
 0x11e   : > { %1566 = vst [vmem:[%s1971_s15 + $0x20] sm:$0xff] %v1506_v2   ;;  %1574 = vst [vmem:[%s1971_s15 + $0x60] sm:$0xff] %v1546_v3   ;;  %v975_v10 = vmul.f32 %v1629_v4, %v1952_v51  ;;  %v991_v11 = vmul.f32 %v1677_v5, %v1952_v51 }
 0x11f   : > { %v1631_v12 = vpop.f32.mrf.mxu0  ;;  %v1679_v13 = vpop.f32.mrf.mxu1  ;;  %v1045_v22 = vmax.f32 %v1013_v8, 0.0  ;;  %v1061_v23 = vmax.f32 %v1029_v9, 0.0 }
 0x120   : > { %v1632_v14 = vadd.f32 %v1631_v12, %v1630_v6  ;;  %v1680_v15 = vadd.f32 %v1679_v13, %v1678_v7  ;;  %v1014_v16 = vadd.f32 %v1959_v59, %v975_v10  ;;  %v1030_v17 = vadd.f32 %v1959_v59, %v991_v11 }
 0x121   : > { %v1633_v18 = vpop.f32.mrf.mxu0  ;;  %v1681_v19 = vpop.f32.mrf.mxu1 }
 0x122   : > { %v976_v20 = vmul.f32 %v1632_v14, %v1952_v51  ;;  %v992_v21 = vmul.f32 %v1680_v15, %v1952_v51  ;;  %v1046_v24 = vmax.f32 %v1014_v16, 0.0  ;;  %v1062_v25 = vmax.f32 %v1030_v17, 0.0 }
 0x123   : > { %v1634_v26 = vpop.f32.mrf.mxu0  ;;  %v1682_v27 = vpop.f32.mrf.mxu1 }
 0x124   : > { %v1635_v28 = vadd.f32 %v1634_v26, %v1633_v18  ;;  %v1683_v29 = vadd.f32 %v1682_v27, %v1681_v19  ;;  %v1511_v30 = vpack.c.bf16 %v1046_v24, %v1045_v22  ;;  %v1551_v31 = vpack.c.bf16 %v1062_v25, %v1061_v23 }
 0x125   : > { %v1636_v32 = vpop.f32.mrf.mxu0  ;;  %v1684_v33 = vpop.f32.mrf.mxu1  ;;  %v1015_v34 = vadd.f32 %v1959_v59, %v976_v20  ;;  %v1031_v35 = vadd.f32 %v1959_v59, %v992_v21 }
 0x126   : > { %v977_v36 = vmul.f32 %v1635_v28, %v1952_v51  ;;  %v993_v37 = vmul.f32 %v1683_v29, %v1952_v51  ;;  %1567 = vst [vmem:[%s1971_s15 + $0x28] sm:$0xff] %v1511_v30   ;;  %1575 = vst [vmem:[%s1971_s15 + $0x68] sm:$0xff] %v1551_v31  }
 0x127   : > { %v1637_v38 = vpop.f32.mrf.mxu0  ;;  %v1685_v39 = vpop.f32.mrf.mxu1  ;;  %v1047_v46 = vmax.f32 %v1015_v34, 0.0  ;;  %v1063_v47 = vmax.f32 %v1031_v35, 0.0 }
 0x128   : > { %v1016_v40 = vadd.f32 %v1959_v59, %v977_v36  ;;  %v1032_v41 = vadd.f32 %v1959_v59, %v993_v37  ;;  %v1638_v42 = vadd.f32 %v1637_v38, %v1636_v32  ;;  %v1686_v43 = vadd.f32 %v1685_v39, %v1684_v33 }
 0x129   : > { %v1639_v44 = vpop.f32.mrf.mxu0  ;;  %v1687_v45 = vpop.f32.mrf.mxu1 }
 0x12a   : > { %v1048_v48 = vmax.f32 %v1016_v40, 0.0  ;;  %v1064_v49 = vmax.f32 %v1032_v41, 0.0  ;;  %v978_v50 = vmul.f32 %v1638_v42, %v1952_v51  ;;  %v994_v52 = vmul.f32 %v1686_v43, %v1952_v51 }
 0x12b   : > { %v1640_v53 = vpop.f32.mrf.mxu0  ;;  %v1688_v54 = vpop.f32.mrf.mxu1 }
 0x12c   : > { %v1516_v55 = vpack.c.bf16 %v1048_v48, %v1047_v46  ;;  %v1556_v56 = vpack.c.bf16 %v1064_v49, %v1063_v47  ;;  %v1641_v57 = vadd.f32 %v1640_v53, %v1639_v44  ;;  %v1689_v58 = vadd.f32 %v1688_v54, %v1687_v45 }
 0x12d   : > { %v1017_v60 = vadd.f32 %v1959_v59, %v978_v50  ;;  %v1033_v61 = vadd.f32 %v1959_v59, %v994_v52 }
 0x12e   : > { %1568 = vst [vmem:[%s1971_s15 + $0x30] sm:$0xff] %v1516_v55   ;;  %1576 = vst [vmem:[%s1971_s15 + $0x70] sm:$0xff] %v1556_v56   ;;  %v979_v62 = vmul.f32 %v1641_v57, %v1952_v51  ;;  %v995_v63 = vmul.f32 %v1689_v58, %v1952_v51 }
 0x12f   : > { %v1049_v2 = vmax.f32 %v1017_v60, 0.0  ;;  %v1065_v3 = vmax.f32 %v1033_v61, 0.0 }
 0x130   : > { %v1018_v0 = vadd.f32 %v1959_v59, %v979_v62  ;;  %v1034_v1 = vadd.f32 %v1959_v59, %v995_v63 }
 0x132   : > { %v1050_v4 = vmax.f32 %v1018_v0, 0.0  ;;  %v1066_v5 = vmax.f32 %v1034_v1, 0.0 }
 0x134   : > { %v1521_v6 = vpack.c.bf16 %v1050_v4, %v1049_v2  ;;  %v1561_v7 = vpack.c.bf16 %v1066_v5, %v1065_v3 }
 0x136   : > { %1569 = vst [vmem:[%s1971_s15 + $0x38] sm:$0xff] %v1521_v6   ;;  %1577 = vst [vmem:[%s1971_s15 + $0x78] sm:$0xff] %v1561_v7  }
 0x137 PF: > { %s14_s17 = sadd.s32 1, %s1816_s17   ;;  %s2059_s15 = smov %s1812_s16 }
 0x138   : > { %p11_p5 = scmp.ge.s32.totalorder %s14_s17, 10   ;;  %s2060_s16 = smov %s2062_s18 }
 0x13a   :  { %13 = sbr.rel (!%p11_p5) target bundleno = 2 (0x2), region = 83 }

</bundles_post_ra>
